<compile_context>
chip_gen: v7x
topology: tpu7x:2x2x1
jax: 0.10.0
libtpu: 0.0.40
codegen_flags: <defaults>
</compile_context>

<pallas_src>
import jax
import jax.numpy as jnp
from jax.experimental import pallas as pl
from jax.experimental.pallas import tpu as pltpu


# Below this many output bytes plain XLA wins (pallas_call launch/pipeline
# priming overhead dwarfs the data movement).
_MIN_PALLAS_OUT_BYTES = 32 * 1024
# Per-block VMEM budget per buffer; <= 4x this with double-buffered in + out,
# far under the 32 MiB scoped default on v5e/v6e/v7x.
_TARGET_BLOCK_BYTES = 4 * 1024 * 1024
_MAX_BLOCK_N = 2048


def _piece2word_kernel(x_ref, o_ref):
    # x_ref: (BLOCK_N, H) -- the BlockSpec already fetched only piece 0 (the
    # first H columns of the (N, P*H) view), so this is a straight copy.
    o_ref[...] = x_ref[...]


def _choose_block_n(n: int, row_bytes: int) -> int:
    bn = _TARGET_BLOCK_BYTES // max(row_bytes, 1)
    bn = min(bn, _MAX_BLOCK_N)
    bn = (bn // 64) * 64        # multiple of 64 rows: sublane-safe for f32/bf16/int8
    bn = max(bn, 64)
    if n <= bn:
        return n                # full extent along N is always a legal block
    return bn


def _piece2word_pallas(x: jax.Array) -> jax.Array:
    """Pallas path. Requires H % 128 == 0 (lane-dense) when P > 1."""
    n, p, h = x.shape
    itemsize = x.dtype.itemsize

    # Metadata-only view: row i holds the P*H contiguous values of word i;
    # its first H columns are exactly piece 0.
    x2 = x.reshape(n, p * h)

    block_n = _choose_block_n(n, h * itemsize)
    grid = (pl.cdiv(n, block_n),)

    first = pl.pallas_call(
        _piece2word_kernel,
        out_shape=jax.ShapeDtypeStruct((n, h), x.dtype),
        grid=grid,
        in_specs=[
            # Fetch only column-block 0 (the first H lanes of each row block):
            # this is the P-fold HBM read reduction.
            pl.BlockSpec((block_n, h), lambda i: (i, 0)),
        ],
        out_specs=pl.BlockSpec((block_n, h), lambda i: (i, 0)),
        compiler_params=pltpu.CompilerParams(
            dimension_semantics=("parallel",),
        ),
        cost_estimate=pl.CostEstimate(
            flops=0,
            transcendentals=0,
            bytes_accessed=2 * n * h * itemsize,
        ),
    )(x2)
    # .view(1, 1, -1): metadata-only reshape, done outside the kernel.
    return first.reshape(1, 1, n * h)


def piece2word(x: jax.Array) -> jax.Array:
    """Piece2Word.forward: x[:, 0, :].reshape(1, 1, -1)."""
    n, p, h = x.shape
    itemsize = x.dtype.itemsize
    if p == 1:
        # Nothing to gather; the whole tensor is piece 0.
        return x.reshape(1, 1, n * h)
    if h % 128 != 0 or n * h * itemsize < _MIN_PALLAS_OUT_BYTES:
        # Tiny or lane-unaligned: XLA's fused strided slice avoids masked
        # vst.msk stores and pallas_call launch overhead.
        return x[:, 0, :].reshape(1, 1, n * h)
    return _piece2word_pallas(x)


if __name__ == "__main__":
    key = jax.random.PRNGKey(0)
    k1, k2 = jax.random.split(key)

    # 1) Shape that exercises the Pallas kernel: 256 words x 4 pieces x 128 hidden
    #    (f32, 512 KiB input -- still small, but lane-aligned and past the
    #    launch-overhead threshold).
    N, P, H = 256, 4, 128
    x = jax.random.normal(k1, (N, P, H), dtype=jnp.float32)
    out = jax.block_until_ready(_piece2word_pallas(x))
    ref = x[:, 0, :].reshape(1, 1, -1)
    assert out.shape == (1, 1, N * H), out.shape
    assert out.dtype == x.dtype
    assert jnp.array_equal(out, ref), "pallas path mismatch vs. reference"

    # 2) Module-sized tiny input (8 words, 4 pieces, hidden 32): the dispatcher
    #    takes the plain-JAX fast path, with identical semantics.
    n2, p2, h2 = 8, 4, 32
    x_small = jax.random.normal(k2, (n2, p2, h2), dtype=jnp.float32)
    out_small = jax.block_until_ready(piece2word(x_small))
    ref_small = x_small[:, 0, :].reshape(1, 1, -1)
    assert out_small.shape == (1, 1, n2 * h2), out_small.shape
    assert jnp.array_equal(out_small, ref_small), "fallback mismatch vs. reference"

    print("KERNEL_OK")
</pallas_src>

<mosaic_0001>
module attributes {stable_mosaic.version = 11 : i64} {
  func.func @_piece2word_kernel(%arg0: i32, %arg1: memref<256x128xf32, #tpu.memory_space<vmem>>, %arg2: memref<256x128xf32, #tpu.memory_space<vmem>>) attributes {dimension_semantics = [#tpu.dimension_semantics<parallel>], iteration_bounds = array<i64: 1>, scalar_prefetch = 0 : i64, scratch_operands = 0 : i64, tpu.core_type = #tpu.core_type<tc>, window_params = [{transform_indices = @transform_0, window_bounds = array<i64: 256, 128>}, {transform_indices = @transform_1, window_bounds = array<i64: 256, 128>}]} {
    %c0 = arith.constant 0 : index
    %c0_0 = arith.constant 0 : index
    %0 = vector.load %arg1[%c0, %c0_0] : memref<256x128xf32, #tpu.memory_space<vmem>>, vector<256x128xf32>
    %c0_1 = arith.constant 0 : index
    %c0_2 = arith.constant 0 : index
    %1 = vector.load %arg2[%c0_1, %c0_2] : memref<256x128xf32, #tpu.memory_space<vmem>>, vector<256x128xf32>
    tpu.vector_store %arg2[%c0_1, %c0_2], %0 {strides = array<i32>} : memref<256x128xf32, #tpu.memory_space<vmem>>, vector<256x128xf32>,
    return
  }
  func.func @transform_0(%arg0: i32) -> (i32, i32) {
    %c0_i32 = arith.constant 0 : i32
    %c0_i32_0 = arith.constant 0 : i32
    return %arg0, %c0_i32 : i32, i32
  }
  func.func @transform_1(%arg0: i32) -> (i32, i32) {
    %c0_i32 = arith.constant 0 : i32
    %c0_i32_0 = arith.constant 0 : i32
    return %arg0, %c0_i32 : i32, i32
  }
}

</mosaic_0001>

<bundles_post_ra>
// kernel: tpu_custom_call.1
= control target key start
LH: loop header
LB: loop body
LE: loop exit
PB: predicated region body
PF: predicated region fallthrough
CT: control target
= control target key end

     0   :  { %6 = vsyncpa [#allocation3], 0  ;;  %s204_s0 = inlined_call_operand.hbm [shape: f32[256,512], index: 0, kind: input, shape index: {}]   ;;  %s205_s1 = inlined_call_operand.hbm [shape: f32[256,128], index: 1, kind: output, shape index: {}]  }
   0x1   :  { %7 = vsyncpa [#allocation4], 0  ;;  %s157_s6 = smov [#allocation2]   ;;  %s109_s10 = scalar_lea.hbm %s204_s0, 4096 }
   0x2   :  { %s13_s7 = sshll.u32 %s157_s6, 4  ;;  %p110_p0 = scmp.ne.s32.totalorder %s204_s0, %s109_s10  ;;  %s14_s7 = int_to_ptr.vmem [resolvable:$true] %s13_s7 }
   0x3   :  { %s111_s15 = scalar_lea.hbm %s204_s0, 16384  ;;  %p113_p2 = scmp.lt.u32.totalorder %s109_s10, %s204_s0 }
   0x4   :  { %p112_p1 = scmp.lt.u32.totalorder %s111_s15, %s109_s10 }
   0x6   :  { %p114_p3 = por %p113_p2, %p112_p1 }
   0x8   :  { %p115_p4 = pnand %p114_p3, %p110_p0 }
   0xa   :  { %118 = shalt.err (!%p115_p4)
}
   0xb   :  { %s119_s18 = scalar_lea.vmem %s14_s7, 4096  ;;  %p124_p6 = scmp.lt.s32.totalorder %s14_s7, %s14_s7 }
   0xc   :  { %p120_p5 = scmp.ne.s32.totalorder %s14_s7, %s119_s18  ;;  %p125_p7 = scmp.lt.s32.totalorder %s119_s18, %s119_s18 }
   0xe   :  { %p126_p8 = por %p125_p7, %p124_p6 }
  0x10   :  { %p127_p9 = pnand %p126_p8, %p120_p5 }
  0x12   :  { %130 = shalt.err (!%p127_p9)
}
  0x13   :  { %s158_s19 = smov 512   ;;  %s159_s20 = smov 128  }
  0x14   :  { %s160_s21 = smov 8  }
  0x15   :  { %19 = dma.hbm_to_vmem [thread:$0]  %s204_s0, 4096, %s14_s7, [#allocation3], %s158_s19, %s159_s20, %s160_s21  }
  0x16   :  { %153 = dma.done.wait [#allocation3], 4096  }
  0x17   :  { %154 = vsyncadd [#allocation3], 4294963200  ;;  %v23_v0 = vld [vmem:[#allocation2] sm:$0xff]  ;;  %v24_v1 = vld [vmem:[#allocation2 + $0x8] sm:$0xff]  ;;  %s161_s0 = smov [#allocation5]  }
  0x18   :  { %v25_v2 = vld [vmem:[#allocation2 + $0x10] sm:$0xff]  ;;  %55 = vst [vmem:[#allocation5] sm:$0xff] %v23_v0  ;;  %56 = vst [vmem:[#allocation5 + $0x8] sm:$0xff] %v24_v1  ;;  %v26_v3 = vld [vmem:[#allocation2 + $0x18] sm:$0xff]  ;;  %s92_s24 = sshll.u32 %s161_s0, 4  ;;  %s93_s24 = int_to_ptr.vmem [resolvable:$true] %s92_s24 }
  0x19   :  { %57 = vst [vmem:[#allocation5 + $0x10] sm:$0xff] %v25_v2  ;;  %v27_v4 = vld [vmem:[#allocation2 + $0x20] sm:$0xff]  ;;  %v28_v5 = vld [vmem:[#allocation2 + $0x28] sm:$0xff]  ;;  %58 = vst [vmem:[#allocation5 + $0x18] sm:$0xff] %v26_v3  ;;  %s131_s25 = scalar_lea.vmem %s93_s24, 4096  ;;  %p136_p11 = scmp.lt.s32.totalorder %s93_s24, %s93_s24 }
  0x1a   :  { %59 = vst [vmem:[#allocation5 + $0x20] sm:$0xff] %v27_v4  ;;  %60 = vst [vmem:[#allocation5 + $0x28] sm:$0xff] %v28_v5  ;;  %v29_v6 = vld [vmem:[#allocation2 + $0x30] sm:$0xff]  ;;  %v30_v7 = vld [vmem:[#allocation2 + $0x38] sm:$0xff]  ;;  %p132_p10 = scmp.ne.s32.totalorder %s93_s24, %s131_s25  ;;  %p137_p12 = scmp.lt.s32.totalorder %s131_s25, %s131_s25 }
  0x1b   :  { %v31_v8 = vld [vmem:[#allocation2 + $0x40] sm:$0xff]  ;;  %61 = vst [vmem:[#allocation5 + $0x30] sm:$0xff] %v29_v6  ;;  %62 = vst [vmem:[#allocation5 + $0x38] sm:$0xff] %v30_v7  ;;  %v32_v9 = vld [vmem:[#allocation2 + $0x48] sm:$0xff] }
  0x1c   :  { %63 = vst [vmem:[#allocation5 + $0x40] sm:$0xff] %v31_v8  ;;  %v33_v10 = vld [vmem:[#allocation2 + $0x50] sm:$0xff]  ;;  %v34_v11 = vld [vmem:[#allocation2 + $0x58] sm:$0xff]  ;;  %64 = vst [vmem:[#allocation5 + $0x48] sm:$0xff] %v32_v9  ;;  %p138_p13 = por %p137_p12, %p136_p11 }
  0x1d   :  { %65 = vst [vmem:[#allocation5 + $0x50] sm:$0xff] %v33_v10  ;;  %66 = vst [vmem:[#allocation5 + $0x58] sm:$0xff] %v34_v11  ;;  %v35_v12 = vld [vmem:[#allocation2 + $0x60] sm:$0xff]  ;;  %v36_v13 = vld [vmem:[#allocation2 + $0x68] sm:$0xff] }
  0x1e   :  { %v37_v14 = vld [vmem:[#allocation2 + $0x70] sm:$0xff]  ;;  %67 = vst [vmem:[#allocation5 + $0x60] sm:$0xff] %v35_v12  ;;  %68 = vst [vmem:[#allocation5 + $0x68] sm:$0xff] %v36_v13  ;;  %v38_v15 = vld [vmem:[#allocation2 + $0x78] sm:$0xff]  ;;  %p139_p0 = pnand %p138_p13, %p132_p10 }
  0x1f   :  { %69 = vst [vmem:[#allocation5 + $0x70] sm:$0xff] %v37_v14  ;;  %v39_v16 = vld [vmem:[#allocation2 + $0x80] sm:$0xff]  ;;  %v40_v17 = vld [vmem:[#allocation2 + $0x88] sm:$0xff]  ;;  %70 = vst [vmem:[#allocation5 + $0x78] sm:$0xff] %v38_v15 }
  0x20   :  { %71 = vst [vmem:[#allocation5 + $0x80] sm:$0xff] %v39_v16  ;;  %72 = vst [vmem:[#allocation5 + $0x88] sm:$0xff] %v40_v17  ;;  %v41_v18 = vld [vmem:[#allocation2 + $0x90] sm:$0xff]  ;;  %v42_v19 = vld [vmem:[#allocation2 + $0x98] sm:$0xff] }
  0x21   :  { %v43_v20 = vld [vmem:[#allocation2 + $0xa0] sm:$0xff]  ;;  %73 = vst [vmem:[#allocation5 + $0x90] sm:$0xff] %v41_v18  ;;  %74 = vst [vmem:[#allocation5 + $0x98] sm:$0xff] %v42_v19  ;;  %v44_v21 = vld [vmem:[#allocation2 + $0xa8] sm:$0xff] }
  0x22   :  { %75 = vst [vmem:[#allocation5 + $0xa0] sm:$0xff] %v43_v20  ;;  %v45_v22 = vld [vmem:[#allocation2 + $0xb0] sm:$0xff]  ;;  %v46_v23 = vld [vmem:[#allocation2 + $0xb8] sm:$0xff]  ;;  %76 = vst [vmem:[#allocation5 + $0xa8] sm:$0xff] %v44_v21 }
  0x23   :  { %77 = vst [vmem:[#allocation5 + $0xb0] sm:$0xff] %v45_v22  ;;  %78 = vst [vmem:[#allocation5 + $0xb8] sm:$0xff] %v46_v23  ;;  %v47_v24 = vld [vmem:[#allocation2 + $0xc0] sm:$0xff]  ;;  %v48_v25 = vld [vmem:[#allocation2 + $0xc8] sm:$0xff] }
  0x24   :  { %v49_v26 = vld [vmem:[#allocation2 + $0xd0] sm:$0xff]  ;;  %79 = vst [vmem:[#allocation5 + $0xc0] sm:$0xff] %v47_v24  ;;  %80 = vst [vmem:[#allocation5 + $0xc8] sm:$0xff] %v48_v25  ;;  %v50_v27 = vld [vmem:[#allocation2 + $0xd8] sm:$0xff] }
  0x25   :  { %81 = vst [vmem:[#allocation5 + $0xd0] sm:$0xff] %v49_v26  ;;  %v51_v28 = vld [vmem:[#allocation2 + $0xe0] sm:$0xff]  ;;  %v52_v29 = vld [vmem:[#allocation2 + $0xe8] sm:$0xff]  ;;  %82 = vst [vmem:[#allocation5 + $0xd8] sm:$0xff] %v50_v27 }
  0x26   :  { %83 = vst [vmem:[#allocation5 + $0xe0] sm:$0xff] %v51_v28  ;;  %84 = vst [vmem:[#allocation5 + $0xe8] sm:$0xff] %v52_v29  ;;  %v53_v30 = vld [vmem:[#allocation2 + $0xf0] sm:$0xff]  ;;  %v54_v31 = vld [vmem:[#allocation2 + $0xf8] sm:$0xff] }
  0x27   :  { %85 = vst [vmem:[#allocation5 + $0xf0] sm:$0xff] %v53_v30  ;;  %86 = vst [vmem:[#allocation5 + $0xf8] sm:$0xff] %v54_v31 }
  0x28   :  { %142 = shalt.err (!%p139_p0)
}
  0x29   :  { %s143_s28 = scalar_lea.hbm %s205_s1, 4096 }
  0x2a   :  { %p144_p1 = scmp.ne.s32.totalorder %s205_s1, %s143_s28  ;;  %p147_p2 = scmp.lt.u32.totalorder %s143_s28, %s205_s1 }
  0x2c   :  { %p149_p3 = pnand %p147_p2, %p144_p1 }
  0x2e   :  { %152 = shalt.err (!%p149_p3)
}
  0x2f   :  { %98 = dma.vmem_to_hbm [thread:$0]  %s93_s24, 4096, %s205_s1, [#allocation4], %s159_s20, %s159_s20, %s160_s21  }
  0x30   :  { %155 = dma.done.wait [#allocation4], 4096  }
  0x31   :  { %156 = vsyncadd [#allocation4], 4294963200 }
  0x32   :  { %102 = vsyncpa [#allocation3], 1 }
  0x33   :  { %103 = vsyncpa [#allocation4], 1 }

</bundles_post_ra>
